<compile_context>
chip_gen: v7x
topology: tpu7x:2x2x1
jax: 0.10.0
libtpu: 0.0.40
codegen_flags: <defaults>
</compile_context>

<pallas_src>
import functools

import jax
import jax.numpy as jnp
from jax.experimental import pallas as pl
from jax.experimental.pallas import tpu as pltpu


def _round_up(x, m):
    return (x + m - 1) // m * m


def _cdiv(a, b):
    return (a + b - 1) // b


def _vmem_capacity_bytes():
    """Physical per-TensorCore VMEM; conservative fallback if unqueryable."""
    try:
        info = pltpu.get_tpu_info()
        cap = getattr(info, "vmem_capacity_bytes", None)
        if cap:
            return int(cap)
    except Exception:
        pass
    return 64 << 20  # v7x per-TC capacity (smallest across generations)


def _resident_spec(block_shape):
    """Whole-array block, constant index_map -> VMEM-resident across the grid.

    Single-buffered (Buffered(1)): the block is never re-fetched, so the
    default double-buffering would only waste VMEM (matters most on v7x).
    """
    index_map = lambda i: (0,) * len(block_shape)
    if hasattr(pl, "Buffered"):
        try:
            return pl.BlockSpec(block_shape, index_map, pipeline_mode=pl.Buffered(1))
        except TypeError:
            pass
    return pl.BlockSpec(block_shape, index_map)


def highway_kernel(x_ref, w_ref, b_ref, o_ref, *, n_layers, half, approx_sigmoid):
    # x_ref: (tm, Dp)        flattened token tile (io dtype, typically bf16)
    # w_ref: (n, Dp, 2*Dp)   fused [gate | linear] weights, (in, out) layout
    # b_ref: (n, 1, 2*Dp)    fused biases (f32)
    # o_ref: (tm, Dp)
    #
    # Padding invariant: columns D..Dp of x enter as exact 0 and the weights /
    # biases are zero-padded, so for those columns z == 0, relu(0) == 0 and the
    # combine x + gate*(nl - x) == 0 + g*(0 - 0) == 0 every layer; the wrapper
    # slices them off. Any change to the activation or to bias padding must
    # preserve this invariant.
    mxu_dtype = w_ref.dtype
    x = x_ref[...].astype(jnp.float32)
    # n_layers is small & static -> Python unroll is fine.
    # For deep stacks, switch to lax.fori_loop with dynamic w_ref[i] indexing
    # (and per-layer weight streaming on v7x) to keep vreg pressure flat.
    for i in range(n_layers):
        z = jnp.dot(x.astype(mxu_dtype), w_ref[i],
                    preferred_element_type=jnp.float32)
        z = z + b_ref[i].astype(jnp.float32)
        zg = z[:, :half]                         # lane-aligned (half % 128 == 0)
        nl = jnp.maximum(z[:, half:], 0.0)
        if approx_sigmoid:
            # exp and reciprocal both run on the EUP slot (off the VPU divide).
            gate = pl.reciprocal(1.0 + jnp.exp(-zg), approx=True)
        else:
            gate = jax.nn.sigmoid(zg)
        x = x + gate * (nl - x)                  # == gate*nl + (1-gate)*x
    o_ref[...] = x.astype(o_ref.dtype)


def prepare_highway_params(wl, bl, wg, bg, mxu_dtype=jnp.bfloat16):
    """One-time parameter prep (hoisted out of the per-call wrapper).

    torch-layout (out, in) weights -> (in, out); feature dim zero-padded to a
    multiple of 128; gate and linear projections fused along the output dim so
    the kernel does a single (tm, Dp) @ (Dp, 2*Dp) matmul per layer.
    """
    n, D, _ = wl.shape
    Dp = _round_up(D, 128)
    pad = Dp - D
    wg_t = jnp.pad(jnp.transpose(wg, (0, 2, 1)), ((0, 0), (0, pad), (0, pad)))
    wl_t = jnp.pad(jnp.transpose(wl, (0, 2, 1)), ((0, 0), (0, pad), (0, pad)))
    w_fused = jnp.concatenate([wg_t, wl_t], axis=2).astype(mxu_dtype)     # (n, Dp, 2*Dp)
    bg_p = jnp.pad(bg, ((0, 0), (0, pad)))
    bl_p = jnp.pad(bl, ((0, 0), (0, pad)))
    b_fused = jnp.concatenate([bg_p, bl_p], axis=1).astype(jnp.float32)
    b_fused = b_fused.reshape(n, 1, 2 * Dp)                               # (n, 1, 2*Dp)
    return w_fused, b_fused


def highway(x, w_fused, b_fused, *, io_dtype=jnp.bfloat16, approx_sigmoid=True):
    """x: (B, S, D); w_fused: (n, Dp, 2*Dp); b_fused: (n, 1, 2*Dp)."""
    B, S, D = x.shape
    n, Dp, _ = w_fused.shape
    M = B * S

    io_item = jnp.dtype(io_dtype).itemsize

    # Token-axis tiling: balanced tiles derived from a step count.
    #   * >= 2 grid steps so megacore sharding engages on v7x,
    #   * up to 1024 rows per tile (2048 when Dp is narrow) for HBM-roofline
    #     efficiency and per-step-overhead amortization,
    #   * no near-empty trailing tile (tm comes from cdiv(M, n_steps)).
    tm_max = 2048 if Dp <= 256 else 1024
    n_steps = max(2, _cdiv(M, tm_max))
    row_align = 8 if io_item >= 4 else 16        # keep bf16 sublane packing clean
    tm = _round_up(_cdiv(M, n_steps), row_align)
    Mp = n_steps * tm

    x2d = jnp.pad(x.reshape(M, D).astype(io_dtype), ((0, Mp - M), (0, Dp - D)))

    # VMEM budget: single-buffered resident weights/biases + double-buffered
    # I/O tiles + f32 intermediates + slack, capped at physical capacity - 8 MiB.
    w_bytes = w_fused.size * w_fused.dtype.itemsize
    b_bytes = b_fused.size * b_fused.dtype.itemsize
    io_bytes = 4 * tm * Dp * io_item             # 2x double-buffered in + out
    interm_bytes = 6 * tm * Dp * 4               # f32 temporaries inside the body
    need = w_bytes + b_bytes + io_bytes + interm_bytes + (4 << 20)
    vmem_cap = _vmem_capacity_bytes() - (8 << 20)
    vmem_limit = int(min(vmem_cap, max(32 << 20, need)))
    # NOTE: for large Highway stacks (n*Dp*2*Dp weights approaching vmem_cap,
    # e.g. n>=4, Dp>=1024 on v7x) switch to per-layer weight streaming inside
    # the body (pltpu.emit_pipeline over the layer index) instead of keeping
    # all layers resident; not needed for QANet-sized configs.

    # Advisory cost hint uses the *unpadded* problem size.
    cost = pl.CostEstimate(
        flops=2 * n * M * D * (2 * D),
        transcendentals=n * M * D,
        bytes_accessed=2 * M * D * io_item + w_bytes + b_bytes,
    )

    kernel = functools.partial(highway_kernel, n_layers=n, half=Dp,
                               approx_sigmoid=approx_sigmoid)
    out2d = pl.pallas_call(
        kernel,
        out_shape=jax.ShapeDtypeStruct((Mp, Dp), io_dtype),
        grid=(n_steps,),
        in_specs=[
            pl.BlockSpec((tm, Dp), lambda i: (i, 0)),
            _resident_spec((n, Dp, 2 * Dp)),     # VMEM-resident, single-buffered
            _resident_spec((n, 1, 2 * Dp)),      # VMEM-resident, single-buffered
        ],
        out_specs=pl.BlockSpec((tm, Dp), lambda i: (i, 0)),
        compiler_params=pltpu.CompilerParams(
            dimension_semantics=("parallel",),   # megacore sharding on v7x
            vmem_limit_bytes=vmem_limit),
        cost_estimate=cost,
    )(x2d, w_fused, b_fused)

    return out2d[:M, :D].astype(x.dtype).reshape(B, S, D)


def highway_ref(x, wl, bl, wg, bg):
    """Pure-JAX reference mirroring the PyTorch forward."""
    n = wl.shape[0]
    for i in range(n):
        gate = jax.nn.sigmoid(jnp.einsum('bsd,od->bso', x, wg[i]) + bg[i])
        nonlinear = jax.nn.relu(jnp.einsum('bsd,od->bso', x, wl[i]) + bl[i])
        x = gate * nonlinear + (1.0 - gate) * x
    return x


if __name__ == "__main__":
    n_layers = 2
    B, S, D = 2, 8, 32

    key = jax.random.PRNGKey(0)
    kx, kwl, kbl, kwg, kbg = jax.random.split(key, 5)

    # Deterministic init, matching nn.Linear's U(-1/sqrt(dim), 1/sqrt(dim)).
    bound = 1.0 / jnp.sqrt(jnp.float32(D))
    x = jax.random.normal(kx, (B, S, D), dtype=jnp.float32)
    wl = jax.random.uniform(kwl, (n_layers, D, D), jnp.float32, -bound, bound)
    bl = jax.random.uniform(kbl, (n_layers, D), jnp.float32, -bound, bound)
    wg = jax.random.uniform(kwg, (n_layers, D, D), jnp.float32, -bound, bound)
    bg = jax.random.uniform(kbg, (n_layers, D), jnp.float32, -bound, bound)

    ref = highway_ref(x, wl, bl, wg, bg)

    # f32 everything + exact sigmoid: tight check against the reference.
    w32, b32 = prepare_highway_params(wl, bl, wg, bg, mxu_dtype=jnp.float32)
    out32 = highway(x, w32, b32, io_dtype=jnp.float32, approx_sigmoid=False)
    jax.block_until_ready(out32)
    assert out32.shape == (B, S, D)
    assert jnp.allclose(out32, ref, atol=1e-4, rtol=1e-4), "f32 path mismatch vs reference"

    # Default perf path: bf16 weights + bf16 x/out streaming, f32 residual math,
    # EUP-friendly approximate sigmoid. Looser tolerance (bf16 I/O rounding;
    # re-validate tolerance if n_layers grows much beyond a handful).
    wbf, bbf = prepare_highway_params(wl, bl, wg, bg)  # bf16 weights, f32 accumulate
    outbf = highway(x, wbf, bbf)
    jax.block_until_ready(outbf)
    assert outbf.shape == (B, S, D)
    assert jnp.allclose(outbf, ref, atol=5e-2, rtol=5e-2), "bf16 path mismatch vs reference"

    print("KERNEL_OK")
</pallas_src>

<mosaic_0001>
module attributes {stable_mosaic.version = 11 : i64} {
  func.func @highway_kernel(%arg0: i32, %arg1: memref<8x128xf32, #tpu.memory_space<vmem>>, %arg2: memref<2x128x256xf32, #tpu.memory_space<vmem>>, %arg3: memref<2x1x256xf32, #tpu.memory_space<vmem>>, %arg4: memref<8x128xf32, #tpu.memory_space<vmem>>) attributes {dimension_semantics = [#tpu.dimension_semantics<parallel>], iteration_bounds = array<i64: 2>, scalar_prefetch = 0 : i64, scratch_operands = 0 : i64, tpu.core_type = #tpu.core_type<tc>, window_params = [{transform_indices = @transform_0, window_bounds = array<i64: 8, 128>}, {pipeline_mode = #tpu.pipeline_mode<synchronous>, transform_indices = @transform_1, window_bounds = array<i64: 2, 128, 256>}, {pipeline_mode = #tpu.pipeline_mode<synchronous>, transform_indices = @transform_2, window_bounds = array<i64: 2, 1, 256>}, {transform_indices = @transform_3, window_bounds = array<i64: 8, 128>}]} {
    %c0 = arith.constant 0 : index
    %c0_0 = arith.constant 0 : index
    %0 = vector.load %arg1[%c0, %c0_0] : memref<8x128xf32, #tpu.memory_space<vmem>>, vector<8x128xf32>
    %c0_1 = arith.constant 0 : index
    %c0_2 = arith.constant 0 : index
    %c0_3 = arith.constant 0 : index
    %1 = vector.load %arg2[%c0_1, %c0_2, %c0_3] : memref<2x128x256xf32, #tpu.memory_space<vmem>>, vector<1x128x256xf32>
    %2 = vector.shape_cast %1 : vector<1x128x256xf32> to vector<128x256xf32>
    %cst = arith.constant dense<0.000000e+00> : vector<8x256xf32>
    %3 = tpu.matmul %0, %2, %cst {dimension_numbers = #tpu.dot_dimension_numbers<[1], [0], [0], [1], [0, 0, 1, 1], [], []>} : vector<8x128xf32>, vector<128x256xf32>, vector<8x256xf32> -> vector<8x256xf32>
    %c0_4 = arith.constant 0 : index
    %c0_5 = arith.constant 0 : index
    %c0_6 = arith.constant 0 : index
    %4 = vector.load %arg3[%c0_4, %c0_5, %c0_6] : memref<2x1x256xf32, #tpu.memory_space<vmem>>, vector<1x1x256xf32>
    %5 = vector.shape_cast %4 : vector<1x1x256xf32> to vector<1x256xf32>
    %6 = vector.broadcast %5 : vector<1x256xf32> to vector<8x256xf32>
    %7 = arith.addf %3, %6 : vector<8x256xf32>
    %8 = vector.extract_strided_slice %7 {offsets = [0, 0], sizes = [8, 128], strides = [1, 1]} : vector<8x256xf32> to vector<8x128xf32>
    %9 = vector.extract_strided_slice %7 {offsets = [0, 128], sizes = [8, 128], strides = [1, 1]} : vector<8x256xf32> to vector<8x128xf32>
    %cst_7 = arith.constant 0.000000e+00 : f32
    %10 = vector.broadcast %cst_7 : f32 to vector<8x128xf32>
    %11 = arith.maximumf %9, %10 : vector<8x128xf32>
    %12 = arith.negf %8 : vector<8x128xf32>
    %13 = math.exp %12 : vector<8x128xf32>
    %cst_8 = arith.constant 1.000000e+00 : f32
    %14 = vector.broadcast %cst_8 : f32 to vector<8x128xf32>
    %15 = arith.addf %14, %13 : vector<8x128xf32>
    %16 = arith.divf %14, %15 : vector<8x128xf32>
    %17 = arith.subf %11, %0 : vector<8x128xf32>
    %18 = arith.mulf %16, %17 : vector<8x128xf32>
    %19 = arith.addf %0, %18 : vector<8x128xf32>
    %c1 = arith.constant 1 : index
    %c0_9 = arith.constant 0 : index
    %c0_10 = arith.constant 0 : index
    %20 = vector.load %arg2[%c1, %c0_9, %c0_10] : memref<2x128x256xf32, #tpu.memory_space<vmem>>, vector<1x128x256xf32>
    %21 = vector.shape_cast %20 : vector<1x128x256xf32> to vector<128x256xf32>
    %cst_11 = arith.constant dense<0.000000e+00> : vector<8x256xf32>
    %22 = tpu.matmul %19, %21, %cst_11 {dimension_numbers = #tpu.dot_dimension_numbers<[1], [0], [0], [1], [0, 0, 1, 1], [], []>} : vector<8x128xf32>, vector<128x256xf32>, vector<8x256xf32> -> vector<8x256xf32>
    %c1_12 = arith.constant 1 : index
    %c0_13 = arith.constant 0 : index
    %c0_14 = arith.constant 0 : index
    %23 = vector.load %arg3[%c1_12, %c0_13, %c0_14] : memref<2x1x256xf32, #tpu.memory_space<vmem>>, vector<1x1x256xf32>
    %24 = vector.shape_cast %23 : vector<1x1x256xf32> to vector<1x256xf32>
    %25 = vector.broadcast %24 : vector<1x256xf32> to vector<8x256xf32>
    %26 = arith.addf %22, %25 : vector<8x256xf32>
    %27 = vector.extract_strided_slice %26 {offsets = [0, 0], sizes = [8, 128], strides = [1, 1]} : vector<8x256xf32> to vector<8x128xf32>
    %28 = vector.extract_strided_slice %26 {offsets = [0, 128], sizes = [8, 128], strides = [1, 1]} : vector<8x256xf32> to vector<8x128xf32>
    %cst_15 = arith.constant 0.000000e+00 : f32
    %29 = vector.broadcast %cst_15 : f32 to vector<8x128xf32>
    %30 = arith.maximumf %28, %29 : vector<8x128xf32>
    %31 = arith.negf %27 : vector<8x128xf32>
    %32 = math.exp %31 : vector<8x128xf32>
    %cst_16 = arith.constant 1.000000e+00 : f32
    %33 = vector.broadcast %cst_16 : f32 to vector<8x128xf32>
    %34 = arith.addf %33, %32 : vector<8x128xf32>
    %35 = arith.divf %33, %34 : vector<8x128xf32>
    %36 = arith.subf %30, %19 : vector<8x128xf32>
    %37 = arith.mulf %35, %36 : vector<8x128xf32>
    %38 = arith.addf %19, %37 : vector<8x128xf32>
    %c0_17 = arith.constant 0 : index
    %c0_18 = arith.constant 0 : index
    %39 = vector.load %arg4[%c0_17, %c0_18] : memref<8x128xf32, #tpu.memory_space<vmem>>, vector<8x128xf32>
    tpu.vector_store %arg4[%c0_17, %c0_18], %38 {strides = array<i32>} : memref<8x128xf32, #tpu.memory_space<vmem>>, vector<8x128xf32>,
    return
  }
  func.func @transform_0(%arg0: i32) -> (i32, i32) {
    %c0_i32 = arith.constant 0 : i32
    %c0_i32_0 = arith.constant 0 : i32
    return %arg0, %c0_i32 : i32, i32
  }
  func.func @transform_1(%arg0: i32) -> (i32, i32, i32) {
    %c0_i32 = arith.constant 0 : i32
    %c0_i32_0 = arith.constant 0 : i32
    %c0_i32_1 = arith.constant 0 : i32
    %c0_i32_2 = arith.constant 0 : i32
    return %c0_i32, %c0_i32_0, %c0_i32_1 : i32, i32, i32
  }
  func.func @transform_2(%arg0: i32) -> (i32, i32, i32) {
    %c0_i32 = arith.constant 0 : i32
    %c0_i32_0 = arith.constant 0 : i32
    %c0_i32_1 = arith.constant 0 : i32
    %c0_i32_2 = arith.constant 0 : i32
    return %c0_i32, %c0_i32_0, %c0_i32_1 : i32, i32, i32
  }
  func.func @transform_3(%arg0: i32) -> (i32, i32) {
    %c0_i32 = arith.constant 0 : i32
    %c0_i32_0 = arith.constant 0 : i32
    return %arg0, %c0_i32 : i32, i32
  }
}

</mosaic_0001>

<bundles_post_ra>
// kernel: tpu_custom_call.1
= control target key start
LH: loop header
LB: loop body
LE: loop exit
PB: predicated region body
PF: predicated region fallthrough
CT: control target
= control target key end

     0   :  { %8 = vsyncpa [#allocation3], 0  ;;  %s1068_s0 = inlined_call_operand.hbm [shape: f32[16,128], index: 0, kind: input, shape index: {}]   ;;  %s1069_s1 = inlined_call_operand.hbm [shape: f32[2,128,256], index: 1, kind: input, shape index: {}]   ;;  %s1070_s2 = inlined_call_operand.vmem [shape: f32[2,1,256], index: 2, kind: input, shape index: {}]   ;;  %s1071_s3 = inlined_call_operand.hbm [shape: f32[16,128], index: 3, kind: output, shape index: {}]  }
   0x1   :  { %10 = vsyncpa [#allocation3 + $0x1], 0 }
   0x2   :  { %11 = vsyncpa [#allocation6], 0 }
   0x3   :  { %12 = vsyncpa [#allocation4], 0 }
   0x4   :  { %14 = vsyncpa [#allocation4 + $0x1], 0  ;;  %s854_s12 = smov 0   ;;  %s856_s13 = smov 0  }
   0x5   :  { %s858_s14 = smov 0   ;;  %s860_s15 = smov 0  }
   0x6 LB: > { %s875_s16 = sadd.s32 4294967295, %s826_s15   ;;  %s549_s17 = sadd.s32 4294967294, %s826_s15   ;;  %s826_s15 = sphi %s860_s15, %s1091_s15   ;;  %s822_s14 = sphi %s858_s14, %s1090_s14   ;;  %s818_s13 = sphi %s856_s13, %s1089_s13   ;;  %s814_s12 = sphi %s854_s12, %s1088_s12  }
   0x7   : > { %p40_p0 = scmp.ne.s32.totalorder %s818_s13, %s814_s12  ;;  %p1072_p1 = scmp.eq.s32.totalorder %s875_s16, 0 }
   0x8   : > { %p112_p3 = scmp.eq.s32.totalorder %s549_s17, 1  ;;  %p550_p5 = scmp.ge.s32.totalorder %s826_s15, 1 }
   0x9   : > { %p884_p4 = por %p1072_p1, %p40_p0  ;;  %p119_p7 = scmp.lt.s32.totalorder %s826_s15, 3 }
   0xa   : > { %p889_p6 = por %p112_p3, %p40_p0  ;;  %s828_s21 = smov [#allocation5]  }
   0xb   : > { %s1075_s18 = scalar_select %p884_p4, 1, 0 }
   0xc   : > { %s1076_s19 = scalar_select %p889_p6, 1, 0 }
   0xd   : > { %p894_p8 = pnand %p550_p5, %p119_p7  ;;  %s131_s22 = sshll.u32 %s828_s21, 4  ;;  %s898_s22 = int_to_ptr.vmem [resolvable:$true] %s131_s22 }
   0xe   : > { %s910_s24 = sadd.s32 1, %s826_s15   ;;  %s27_s25 = sadd.s32 1, %s822_s14 }
   0xf   : > { %s1077_s20 = scalar_select %p894_p8, 1, 0 }
  0x10   : > { %p638_p9 = pneg %p894_p8  ;;  %s24_s26 = ssub.s32 %s826_s15, %s910_s24 }
  0x11   : > { %s698_s29 = scalar_lea.hbm %s1069_s1, 8192 }
  0x12   : > { %p905_p11 = pnand %p638_p9, %p1072_p1  ;;  %p699_p12 = scmp.ne.s32.totalorder %s1069_s1, %s698_s29 }
  0x13   : > { %p705_p5 = scmp.lt.u32.totalorder %s698_s29, %s1069_s1 }
  0x14   : > { %p700_p13 = pneg %p905_p11 }
  0x16   : > { %p701_p0 = pnand %p700_p13, %p699_p12 }
  0x18   : > { %p702_p3 = pneg %p701_p0 }
  0x1a   : > { %p707_p7 = pnand %p705_p5, %p702_p3 }
  0x1c   : > { %710 = shalt.err (!%p707_p7)
}
  0x1d   : > { %s711_s7 = scalar_lea.vmem %s898_s22, 8192  ;;  %p719_p2 = scmp.lt.s32.totalorder %s898_s22, %s898_s22 }
  0x1e   : > { %p712_p9 = scmp.ne.s32.totalorder %s898_s22, %s711_s7  ;;  %p720_p6 = scmp.lt.s32.totalorder %s711_s7, %s711_s7 }
  0x20   : > { %p714_p10 = pnand %p712_p9, %p700_p13  ;;  %p721_p4 = por %p720_p6, %p719_p2 }
  0x22   : > { %p715_p1 = pneg %p714_p10 }
  0x24   : > { %p722_p8 = pnand %p721_p4, %p715_p1 }
  0x26   : > { %725 = shalt.err (!%p722_p8)
}
  0x27   : > { %s829_s8 = smov 256   ;;  %s830_s9 = smov 16  }
  0x28   : > { %641 = dma.hbm_to_vmem [thread:$0]  (!%p905_p11), %s1069_s1, 8192, %s898_s22, [#allocation6], %s829_s8, %s829_s8, %s830_s9  }
  0x29   : > { %p25_p2 = scmp.eq.s32.totalorder %s24_s26, 0  ;;  %p34_p1 = scmp.ne.s32.totalorder %s822_s14, %s818_s13 }
  0x2a   : > { %p35_p4 = scmp.eq.s32.totalorder %s826_s15, 0  ;;  %p651_p6 = scmp.lt.s32.totalorder %s826_s15, 2 }
  0x2b   : > { %s941_s17 = scalar_select %p25_p2, %s822_s14, %s27_s25  }
  0x2c   : > { %p36_p8 = por %p35_p4, %p34_p1  ;;  %p1079_p10 = scmp.eq.s32.totalorder %s875_s16, 1 }
  0x2d   : > { %s148_s27 = sand.u32 1, %s822_s14   ;;  %s554_s28 = sshll.u32 %s826_s15, 7 }
  0x2e   : > { %p945_p12 = por %p1079_p10, %p34_p1  ;;  %s553_s29 = sshll.u32 %s148_s27, 3 }
  0x2f   : > { %s954_s4 = scalar_lea.hbm %s1068_s0, %s554_s28  ;;  %s152_s22 = scalar_lea.vmem [#allocation2], %s553_s29 }
  0x30   : > { %s159_s25 = sshll.u32 %s152_s22, 4  ;;  %p956_p11 = pnand %p651_p6, %p36_p8  ;;  %s960_s25 = int_to_ptr.vmem [resolvable:$true] %s159_s25 }
  0x31   : > { %s149_s5 = scalar_lea.sflag [#allocation3], %s148_s27  ;;  %s726_s6 = scalar_lea.hbm %s954_s4, 128 }
  0x32   : > { %p727_p13 = scmp.ne.s32.totalorder %s954_s4, %s726_s6  ;;  %p728_p0 = pneg %p956_p11 }
  0x33   : > { %s731_s9 = scalar_lea.hbm %s1068_s0, 256  ;;  %p732_p7 = scmp.lt.u32.totalorder %s954_s4, %s1068_s0 }
  0x34   : > { %p729_p3 = pnand %p728_p0, %p727_p13  ;;  %p733_p9 = scmp.lt.u32.totalorder %s731_s9, %s726_s6 }
  0x35   : > { %p735_p1 = scmp.lt.u32.totalorder %s726_s6, %s954_s4 }
  0x36   : > { %p730_p5 = pneg %p729_p3  ;;  %p734_p2 = por %p733_p9, %p732_p7 }
  0x38   : > { %p736_p4 = por %p735_p1, %p734_p2 }
  0x3a   : > { %p737_p6 = pnand %p736_p4, %p730_p5 }
  0x3c   : > { %740 = shalt.err (!%p737_p6)
}
  0x3d   : > { %s741_s27 = scalar_lea.vmem %s960_s25, 128  ;;  %s831_s28 = smov [#allocation2]  }
  0x3e   : > { %p742_p8 = scmp.ne.s32.totalorder %s960_s25, %s741_s27  ;;  %s746_s29 = sshll.u32 %s831_s28, 4  ;;  %s747_s29 = int_to_ptr.vmem [resolvable:$false] %s746_s29 }
  0x3f   : > { %s748_s23 = scalar_lea.vmem %s747_s29, 256  ;;  %p749_p3 = scmp.lt.s32.totalorder %s960_s25, %s747_s29 }
  0x40   : > { %p744_p10 = pnand %p742_p8, %p728_p0  ;;  %p750_p7 = scmp.lt.s32.totalorder %s748_s23, %s741_s27 }
  0x42   : > { %p745_p13 = pneg %p744_p10  ;;  %p751_p9 = por %p750_p7, %p749_p3 }
  0x44   : > { %p752_p2 = pnand %p751_p9, %p745_p13 }
  0x46   : > { %755 = shalt.err (!%p752_p2)
}
  0x47   : > { %645 = dma.hbm_to_vmem [thread:$0]  (!%p956_p11), %s954_s4, 128, %s960_s25, %s149_s5  }
  0x48   : > { %p1082_p5 = scmp.ne.s32.totalorder %s1077_s20, 0 }
  0x49   : > { %s990_s30 = sand.u32 (!%p1082_p5), 1, %s818_s13   ;;  %p1083_p0 = scmp.ne.s32.totalorder (!%p1082_p5), %s1075_s18, 0 }
  0x4a   : > { %168 = sbr.rel (%p1082_p5) target bundleno = 622 (0x26e), region = 32  ;;  %s556_s22 = sshll.u32 (!%p1082_p5), %s990_s30, 3 }
  0x4b   : > { %s171_s6 = scalar_lea.sflag (!%p1082_p5), [#allocation3], %s990_s30  ;;  %s996_s7 = scalar_lea.vmem (!%p1082_p5), [#allocation2], %s556_s22 }
  0x51   : > { %801 = dma.done.wait (%p1083_p0), %s171_s6, 128  }
  0x52   : > { %803 = vsyncadd (%p1083_p0), %s171_s6, 4294967168  ;;  %p1084_p11 = scmp.eq.s32.totalorder %s875_s16, 0 }
  0x54   : > { %805 = dma.done.wait (%p1084_p11), [#allocation6], 8192   ;;  %p1085_p1 = pmov %p1084_p11 }
  0x55   : > { %v832_v0 = vmov 0.0   ;;  %v203_v1 = vld [vmem:[#allocation5 + $0x8] sm:$0xff]  ;;  %v205_v2 = vld [vmem:[#allocation5 + $0x18] sm:$0xff]  ;;  %v202_v3 = vld [vmem:[#allocation5] sm:$0xff]  ;;  %s563_s26 = sshll.u32 %s875_s16, 7  ;;  %s200_s5 = scalar_lea.vmem [#allocation7], %s556_s22 }
  0x56   : > { %807 = vsyncadd (%p1085_p1), [#allocation6], 4294959104  ;;  %310 = vmatprep.mubr.f32.mxu0 %v832_v0  ;;  %437 = vmatprep.mubr.f32.mxu1 %v832_v0  ;;  %v566_v4 = vpack.c.bf16 %v205_v2, %v203_v1  ;;  %v204_v5 = vld [vmem:[#allocation5 + $0x10] sm:$0xff]  ;;  %v207_v6 = vld [vmem:[#allocation5 + $0x28] sm:$0xff]  ;;  %s469_s8 = sshll.u32 %s200_s5, 4  ;;  %s1024_s11 = scalar_lea.hbm %s1071_s3, %s563_s26  ;;  %s1026_s8 = int_to_ptr.vmem [resolvable:$true] %s469_s8 }
  0x57   : > { %v209_v7 = vld [vmem:[#allocation5 + $0x38] sm:$0xff]  ;;  %v568_v8 = vpack.c.bf16 %v204_v5, %v202_v3  ;;  %v206_v10 = vld [vmem:[#allocation5 + $0x20] sm:$0xff]  ;;  %v208_v11 = vld [vmem:[#allocation5 + $0x30] sm:$0xff]  ;;  %s456_s27 = scalar_lea.sflag [#allocation4], %s990_s30  ;;  %s756_s28 = scalar_lea.vmem %s1026_s8, 128 }
  0x58   : > { %v570_v9 = vpack.c.bf16 %v209_v7, %v207_v6  ;;  %v211_v12 = vld [vmem:[#allocation5 + $0x48] sm:$0xff]  ;;  %567 = vmatprep.subr.bf16.mxu0 %v566_v4  ;;  %v213_v13 = vld [vmem:[#allocation5 + $0x58] sm:$0xff]  ;;  %v572_v14 = vpack.c.bf16 %v208_v11, %v206_v10  ;;  %v210_v16 = vld [vmem:[#allocation5 + $0x40] sm:$0xff]  ;;  %p757_p4 = scmp.ne.s32.totalorder %s1026_s8, %s756_s28  ;;  %s833_s16 = smov [#allocation7]  }
  0x59   : > { %569 = vmatpush1.bf16.msra.mxu0 %v568_v8  ;;  %v574_v15 = vpack.c.bf16 %v213_v13, %v211_v12  ;;  %v212_v17 = vld [vmem:[#allocation5 + $0x50] sm:$0xff]  ;;  %v215_v18 = vld [vmem:[#allocation5 + $0x68] sm:$0xff]  ;;  %v217_v19 = vld [vmem:[#allocation5 + $0x78] sm:$0xff]  ;;  %s760_s29 = sshll.u32 %s833_s16, 4  ;;  %s761_s29 = int_to_ptr.vmem [resolvable:$false] %s760_s29 }
  0x5a   : > { %571 = vmatprep.subr.bf16.mxu0 %v570_v9  ;;  %v576_v20 = vpack.c.bf16 %v212_v17, %v210_v16  ;;  %v578_v21 = vpack.c.bf16 %v217_v19, %v215_v18  ;;  %v214_v22 = vld [vmem:[#allocation5 + $0x60] sm:$0xff]  ;;  %v216_v23 = vld [vmem:[#allocation5 + $0x70] sm:$0xff]  ;;  %v219_v24 = vld [vmem:[#allocation5 + $0x88] sm:$0xff]  ;;  %p758_p6 = pnand %p757_p4, %p945_p12  ;;  %s762_s23 = scalar_lea.vmem %s761_s29, 256 }
  0x5b   : > { %v221_v25 = vld [vmem:[#allocation5 + $0x98] sm:$0xff]  ;;  %v580_v26 = vpack.c.bf16 %v216_v23, %v214_v22  ;;  %v218_v28 = vld [vmem:[#allocation5 + $0x80] sm:$0xff]  ;;  %v220_v29 = vld [vmem:[#allocation5 + $0x90] sm:$0xff]  ;;  %p763_p10 = scmp.lt.s32.totalorder %s1026_s8, %s761_s29  ;;  %p764_p13 = scmp.lt.s32.totalorder %s762_s23, %s756_s28 }
  0x5c   : > { %v582_v27 = vpack.c.bf16 %v221_v25, %v219_v24  ;;  %v223_v30 = vld [vmem:[#allocation5 + $0xa8] sm:$0xff]  ;;  %v225_v31 = vld [vmem:[#allocation5 + $0xb8] sm:$0xff]  ;;  %v584_v32 = vpack.c.bf16 %v220_v29, %v218_v28  ;;  %v222_v34 = vld [vmem:[#allocation5 + $0xa0] sm:$0xff]  ;;  %p759_p8 = pneg %p758_p6 }
  0x5d   : > { %573 = vmatpush1.bf16.msra.mxu0 %v572_v14  ;;  %v586_v33 = vpack.c.bf16 %v225_v31, %v223_v30  ;;  %v224_v35 = vld [vmem:[#allocation5 + $0xb0] sm:$0xff]  ;;  %v227_v36 = vld [vmem:[#allocation5 + $0xc8] sm:$0xff]  ;;  %v229_v37 = vld [vmem:[#allocation5 + $0xd8] sm:$0xff]  ;;  %p765_p3 = por %p764_p13, %p763_p10 }
  0x5e   : > { %575 = vmatprep.subr.bf16.mxu0 %v574_v15  ;;  %v588_v38 = vpack.c.bf16 %v224_v35, %v222_v34  ;;  %v590_v39 = vpack.c.bf16 %v229_v37, %v227_v36  ;;  %v226_v40 = vld [vmem:[#allocation5 + $0xc0] sm:$0xff]  ;;  %v228_v41 = vld [vmem:[#allocation5 + $0xd0] sm:$0xff]  ;;  %v231_v42 = vld [vmem:[#allocation5 + $0xe8] sm:$0xff]  ;;  %v236_v34 = vlaneseq }
  0x5f   : > { %v233_v43 = vld [vmem:[#allocation5 + $0xf8] sm:$0xff]  ;;  %v592_v44 = vpack.c.bf16 %v228_v41, %v226_v40  ;;  %v230_v46 = vld [vmem:[#allocation5 + $0xe0] sm:$0xff]  ;;  %v232_v47 = vld [vmem:[#allocation5 + $0xf0] sm:$0xff]  ;;  %p766_p7 = pnand %p765_p3, %p759_p8 }
  0x60   : > { %v594_v45 = vpack.c.bf16 %v233_v43, %v231_v42  ;;  %v596_v48 = vpack.c.bf16 %v232_v47, %v230_v46  ;;  %v1007_v49 = vld [vmem:[%s996_s7] sm:$0xff]  ;;  %v329_v50 = vld [vmem:[#allocation5 + $0x108] sm:$0xff]  ;;  %v328_v53 = vld [vmem:[#allocation5 + $0x100] sm:$0xff]  ;;  %v237_v35 = vshrl.u32 %v236_v34, 7 }
  0x61   : > { %577 = vmatpush1.bf16.msra.mxu0 %v576_v20  ;;  %v331_v51 = vld [vmem:[#allocation5 + $0x118] sm:$0xff]  ;;  %v330_v54 = vld [vmem:[#allocation5 + $0x110] sm:$0xff]  ;;  %v333_v56 = vld [vmem:[#allocation5 + $0x128] sm:$0xff] }
  0x62   : > { %579 = vmatprep.subr.bf16.mxu0 %v578_v21  ;;  %v598_v52 = vpack.c.bf16 %v331_v51, %v329_v50  ;;  %v600_v55 = vpack.c.bf16 %v330_v54, %v328_v53  ;;  %v335_v57 = vld [vmem:[#allocation5 + $0x138] sm:$0xff]  ;;  %v332_v59 = vld [vmem:[#allocation5 + $0x120] sm:$0xff]  ;;  %v334_v60 = vld [vmem:[#allocation5 + $0x130] sm:$0xff]  ;;  %v238_v36 = vsub.s32 0, %v237_v35  ;;  %v242_v43 = vsub.s32 1, %v237_v35 }
  0x63   : > { %v602_v58 = vpack.c.bf16 %v335_v57, %v333_v56  ;;  %v604_v61 = vpack.c.bf16 %v334_v60, %v332_v59  ;;  %v337_v62 = vld [vmem:[#allocation5 + $0x148] sm:$0xff]  ;;  %v339_v63 = vld [vmem:[#allocation5 + $0x158] sm:$0xff]  ;;  %v336_v1 = vld [vmem:[#allocation5 + $0x140] sm:$0xff] }
  0x64   : > { %599 = vmatprep.subr.bf16.mxu1 %v598_v52  ;;  %v606_v0 = vpack.c.bf16 %v339_v63, %v337_v62  ;;  %v338_v2 = vld [vmem:[#allocation5 + $0x150] sm:$0xff]  ;;  %v341_v4 = vld [vmem:[#allocation5 + $0x168] sm:$0xff]  ;;  %v343_v5 = vld [vmem:[#allocation5 + $0x178] sm:$0xff] }
  0x65   : > { %581 = vmatpush1.bf16.msra.mxu0 %v580_v26  ;;  %601 = vmatpush1.bf16.msra.mxu1 %v600_v55  ;;  %v608_v3 = vpack.c.bf16 %v338_v2, %v336_v1  ;;  %v610_v6 = vpack.c.bf16 %v343_v5, %v341_v4  ;;  %v340_v7 = vld [vmem:[#allocation5 + $0x160] sm:$0xff]  ;;  %v342_v8 = vld [vmem:[#allocation5 + $0x170] sm:$0xff]  ;;  %v345_v10 = vld [vmem:[#allocation5 + $0x188] sm:$0xff] }
  0x66   : > { %583 = vmatprep.subr.bf16.mxu0 %v582_v27  ;;  %603 = vmatprep.subr.bf16.mxu1 %v602_v58  ;;  %v612_v9 = vpack.c.bf16 %v342_v8, %v340_v7  ;;  %v347_v11 = vld [vmem:[#allocation5 + $0x198] sm:$0xff]  ;;  %v344_v13 = vld [vmem:[#allocation5 + $0x180] sm:$0xff]  ;;  %v346_v14 = vld [vmem:[#allocation5 + $0x190] sm:$0xff] }
  0x67   : > { %v614_v12 = vpack.c.bf16 %v347_v11, %v345_v10  ;;  %v616_v15 = vpack.c.bf16 %v346_v14, %v344_v13  ;;  %v349_v16 = vld [vmem:[#allocation5 + $0x1a8] sm:$0xff]  ;;  %v351_v17 = vld [vmem:[#allocation5 + $0x1b8] sm:$0xff]  ;;  %v348_v19 = vld [vmem:[#allocation5 + $0x1a0] sm:$0xff] }
  0x68   : > { %v618_v18 = vpack.c.bf16 %v351_v17, %v349_v16  ;;  %v350_v20 = vld [vmem:[#allocation5 + $0x1b0] sm:$0xff]  ;;  %v353_v22 = vld [vmem:[#allocation5 + $0x1c8] sm:$0xff]  ;;  %v355_v23 = vld [vmem:[#allocation5 + $0x1d8] sm:$0xff] }
  0x69   : > { %585 = vmatpush1.bf16.msra.mxu0 %v584_v32  ;;  %605 = vmatpush1.bf16.msra.mxu1 %v604_v61  ;;  %v620_v21 = vpack.c.bf16 %v350_v20, %v348_v19  ;;  %v622_v24 = vpack.c.bf16 %v355_v23, %v353_v22  ;;  %v352_v25 = vld [vmem:[#allocation5 + $0x1c0] sm:$0xff]  ;;  %v354_v26 = vld [vmem:[#allocation5 + $0x1d0] sm:$0xff]  ;;  %v357_v28 = vld [vmem:[#allocation5 + $0x1e8] sm:$0xff] }
  0x6a   : > { %587 = vmatprep.subr.bf16.mxu0 %v586_v33  ;;  %607 = vmatprep.subr.bf16.mxu1 %v606_v0  ;;  %v624_v27 = vpack.c.bf16 %v354_v26, %v352_v25  ;;  %v359_v29 = vld [vmem:[#allocation5 + $0x1f8] sm:$0xff]  ;;  %v356_v31 = vld [vmem:[#allocation5 + $0x1e0] sm:$0xff]  ;;  %v358_v32 = vld [vmem:[#allocation5 + $0x1f0] sm:$0xff] }
  0x6b   : > { %v626_v30 = vpack.c.bf16 %v359_v29, %v357_v28  ;;  %v628_v33 = vpack.c.bf16 %v358_v32, %v356_v31  ;;  %v234_v37 = vld [vmem:[%s1070_s2] sm:$0x3]  ;;  %v560_v54 = vld [vmem:[%s1070_s2 + $0x2] sm:$0x3] }
  0x6c   : > { %v366_v55 = vrot.slane %v560_v54, %v238_v36  ;;  %v370_v61 = vrot.slane %v560_v54, %v242_v43 }
  0x6d   : > { %589 = vmatpush1.bf16.msra.mxu0 %v588_v38  ;;  %609 = vmatpush1.bf16.msra.mxu1 %v608_v3  ;;  %v239_v38 = vrot.slane %v234_v37, %v238_v36 }
  0x6e   : > { %591 = vmatprep.subr.bf16.mxu0 %v590_v39  ;;  %611 = vmatprep.subr.bf16.mxu1 %v610_v6 }
  0x71   : > { %593 = vmatpush1.bf16.msra.mxu0 %v592_v44  ;;  %613 = vmatpush1.bf16.msra.mxu1 %v612_v9 }
  0x72   : > { %595 = vmatprep.subr.bf16.mxu0 %v594_v45  ;;  %615 = vmatprep.subr.bf16.mxu1 %v614_v12  ;;  %v243_v45 = vrot.slane %v234_v37, %v242_v43 }
  0x75   : > { %597 = vmatpush1.bf16.msra.mxu0 %v596_v48  ;;  %617 = vmatpush1.bf16.msra.mxu1 %v616_v15 }
  0x76   : > { %619 = vmatprep.subr.bf16.mxu1 %v618_v18 }
  0x78   : > { %311 = vmatmul.mubr.f32.vlgmr.msra.gmra.mrb[0].mxu0 %v1007_v49 }
  0x79   : > { %621 = vmatpush1.bf16.msra.mxu1 %v620_v21 }
  0x7a   : > { %623 = vmatprep.subr.bf16.mxu1 %v622_v24 }
  0x7d   : > { %625 = vmatpush1.bf16.msra.mxu1 %v624_v27 }
  0x7e   : > { %627 = vmatprep.subr.bf16.mxu1 %v626_v30 }
  0x81   : > { %629 = vmatpush1.bf16.msra.mxu1 %v628_v33 }
 0x14b   : > { %v312_v39 = vpop.f32.mrb[0].mxu0 }
 0x14c   : > { %v313_v40 = vadd.f32 %v312_v39, %v239_v38  ;;  %v314_v41 = vpop.f32.mrb[1].mxu0 }
 0x14d   : > { %v315_v47 = vadd.f32 %v314_v41, %v243_v45 }
 0x14e   : > { %v559_v42 = vmul.f32 -1.442695, %v313_v40 }
 0x14f   : > { %v317_v48 = vmax.f32 %v315_v47, 0.0 }
 0x150   : > { %690 = vpow2.f32 %v559_v42 }
 0x151   : > { %v324_v50 = vsub.f32 %v317_v48, %v1007_v49 }
 0x15a   : > { %v691_v44 = vpop.eup %690 }
 0x15b   : > { %v321_v46 = vadd.f32 1.0, %v691_v44 }
 0x15d   : > { %692 = vrcp.f32 %v321_v46 }
 0x167   : > { %v693_v51 = vpop.eup %692 }
 0x168   : > { %v325_v52 = vmul.f32 %v693_v51, %v324_v50 }
 0x16a   : > { %v326_v53 = vadd.f32 %v325_v52, %v1007_v49 }
 0x16c   : > { %438 = vmatmul.mubr.f32.vlgmr.msra.gmra.mrb[0].mxu1 %v326_v53 }
 0x23f   : > { %v439_v56 = vpop.f32.mrb[0].mxu1 }
 0x240   : > { %v440_v57 = vadd.f32 %v439_v56, %v366_v55  ;;  %v441_v58 = vpop.f32.mrb[1].mxu1 }
 0x241   : > { %v442_v49 = vadd.f32 %v441_v58, %v370_v61 }
 0x242   : > { %v561_v59 = vmul.f32 -1.442695, %v440_v57 }
 0x243   : > { %v444_v63 = vmax.f32 %v442_v49, 0.0 }
 0x244   : > { %694 = vpow2.f32 %v561_v59 }
 0x245   : > { %v451_v0 = vsub.f32 %v444_v63, %v326_v53 }
 0x24e   : > { %v695_v60 = vpop.eup %694 }
 0x24f   : > { %v448_v62 = vadd.f32 1.0, %v695_v60 }
 0x251   : > { %696 = vrcp.f32 %v448_v62 }
 0x25b   : > { %v697_v1 = vpop.eup %696 }
 0x25c   : > { %v452_v2 = vmul.f32 %v697_v1, %v451_v0 }
 0x25e   : > { %v453_v3 = vadd.f32 %v452_v2, %v326_v53 }
 0x260   : > { %454 = vst [vmem:[%s200_s5] sm:$0xff] %v453_v3 }
 0x261   : > { %769 = shalt.err (!%p766_p7)
}
 0x262   : > { %s770_s30 = scalar_lea.hbm %s1024_s11, 128  ;;  %s774_s7 = scalar_lea.hbm %s1071_s3, 256 }
 0x263   : > { %p771_p9 = scmp.ne.s32.totalorder %s1024_s11, %s770_s30  ;;  %p775_p0 = scmp.lt.u32.totalorder %s1024_s11, %s1071_s3 }
 0x264   : > { %p776_p11 = scmp.lt.u32.totalorder %s774_s7, %s770_s30  ;;  %p778_p4 = scmp.lt.u32.totalorder %s770_s30, %s1024_s11 }
 0x265   : > { %p772_p2 = pnand %p771_p9, %p945_p12 }
 0x266   : > { %p777_p1 = por %p776_p11, %p775_p0 }
 0x267   : > { %p773_p5 = pneg %p772_p2 }
 0x268   : > { %p779_p6 = por %p778_p4, %p777_p1 }
 0x26a   : > { %p780_p8 = pnand %p779_p6, %p773_p5 }
 0x26c   : > { %783 = shalt.err (!%p780_p8)
}
 0x26d   : > { %636 = dma.vmem_to_hbm [thread:$0]  (%p945_p12), %s1026_s8, 128, %s1024_s11, %s456_s27  }
 0x26e PF: > { %s481_s4 = sand.u32 1, %s814_s12   ;;  %p1086_p10 = scmp.ne.s32.totalorder %s1076_s19, 0 }
 0x26f   : > { %p1087_p13 = scmp.ge.s32.totalorder %s826_s15, 2  ;;  %s482_s25 = scalar_lea.sflag [#allocation4], %s481_s4 }
 0x271   : > { %p647_p3 = pnand %p1087_p13, %p1086_p10 }
 0x273   : > { %809 = dma.done.wait (!%p647_p3), %s482_s25, 128  }
 0x274   : > { %811 = vsyncadd (!%p647_p3), %s482_s25, 4294967168  ;;  %p17_p7 = scmp.ge.s32.totalorder %s910_s24, 4   ;;  %s1088_s12 = smov %s818_s13 }
 0x275   : > { %s1089_s13 = smov %s822_s14  ;;  %s1090_s14 = smov %s941_s17 }
 0x276   : > { %s1091_s15 = smov %s910_s24  ;;  %19 = sbr.rel (!%p17_p7) target bundleno = 6 (0x6), region = 83 }
 0x27d   :  { %487 = vsyncpa [#allocation3], 1 }
 0x27e   :  { %489 = vsyncpa [#allocation3 + $0x1], 1 }
 0x27f   :  { %490 = vsyncpa [#allocation6], 1 }
 0x280   :  { %491 = vsyncpa [#allocation4], 1 }
 0x281   :  { %493 = vsyncpa [#allocation4 + $0x1], 1 }

</bundles_post_ra>
